<compile_context>
chip_gen: v7x
topology: tpu7x:2x2x1
jax: 0.10.0
libtpu: 0.0.40
codegen_flags: <defaults>
</compile_context>

<pallas_src>
import jax
import jax.numpy as jnp
from jax.experimental import pallas as pl
from jax.experimental.pallas import tpu as pltpu

_MIB = 1024 * 1024


def _tpu_generation() -> str:
    try:
        kind = jax.devices()[0].device_kind.lower()
    except Exception:
        kind = ""
    if "v5" in kind:
        return "v5"
    if "v6" in kind:
        return "v6"
    if "v7" in kind:
        return "v7"
    return "unknown"


def _budgets() -> tuple[int, int, int]:
    """(fused_threshold_f32_bytes, pipelined_budget_bytes, vmem_limit_bytes)."""
    gen = _tpu_generation()
    if gen in ("v5", "v6"):
        # 128 MiB physical VMEM: raise the limit well past the old 32 MiB cap.
        return 24 * _MIB, 80 * _MIB, 96 * _MIB
    # v7x (64 MiB physical VMEM) and unknown generations: stay conservative.
    return 12 * _MIB, 40 * _MIB, 48 * _MIB


def _pick_tiles(n: int, c: int, hw: int, itemsize: int, budget: int) -> tuple[int, int]:
    """Pick (tile_n, tile_hw) so ~4 double-buffered (tile_n, C, tile_hw) blocks
    (2 input bufs + 2 output bufs of the streaming multiply) fit `budget` bytes.
    Keeps the largest lane-dense tile (512 -> 256 -> 128) and blocks N before ever
    shrinking below 128 lanes."""
    hw_cands = [t for t in (512, 256, 128) if hw % t == 0]
    if not hw_cands:
        # TODO(synk): HW not a multiple of 128 -> single full-extent lane tile; add
        # padded/masked HW tiles if such shapes ever combine with huge N*C.
        hw_cands = [hw]
    # tile_n must be N or a multiple of 8 (it is the second-to-last dim of the 2-D
    # gates output block in the pooling kernel).
    n_cands = [d for d in range(n, 0, -1) if n % d == 0 and (d == n or d % 8 == 0)]
    for tile_hw in hw_cands:            # biggest lane tile first
        for tile_n in n_cands:          # full N first, then block N
            if 4 * tile_n * c * tile_hw * itemsize <= budget:
                return tile_n, tile_hw
    return n_cands[-1], hw_cands[-1]


def se_forward(x_nchw: jax.Array, w1: jax.Array, w2: jax.Array,
               *, tile_hw: int | None = None, tile_n: int | None = None,
               force_streaming: bool = False) -> jax.Array:
    """SE block forward.

    x_nchw : (N, C, H, W)
    w1     : (C // r, C)   -- fc1 1x1-conv weight, squeezed (bias=False)
    w2     : (C, C // r)   -- fc2 1x1-conv weight, squeezed (bias=False)
    returns: (N, C, H, W)
    """
    N, C, H, W = x_nchw.shape
    mid = w1.shape[0]
    assert w1.shape == (mid, C) and w2.shape == (C, mid)

    HW = H * W
    x = x_nchw.reshape(N, C, HW)            # layout plumbing outside the kernel
    itemsize = x.dtype.itemsize
    inv_hw = 1.0 / float(HW)

    fused_thresh, pipe_budget, vmem_limit = _budgets()
    gen = _tpu_generation()

    # f32 math everywhere except the final gate multiply, which stays in bf16 on
    # chips with bf16 VALUs (v6e/v7x) to halve vreg pressure.
    mul_in_f32 = not (x.dtype == jnp.bfloat16 and gen != "v5")

    # Tiny 1x1-conv weights pre-transposed in the wrapper so the kernels do no
    # transposes: pooled (n, C) @ w1_t (C, mid) @ ... @ w2_t (mid, C).
    w1_t = jnp.transpose(w1).astype(jnp.float32)   # (C, mid)
    w2_t = jnp.transpose(w2).astype(jnp.float32)   # (mid, C)

    # ---------------- fused single-pass path (x resident in VMEM) ----------------
    x_work_bytes = N * C * HW * 4            # f32 working-set footprint
    if (not force_streaming and tile_hw is None and tile_n is None
            and x_work_bytes <= fused_thresh):

        def fused_kernel(x_ref, w1_ref, w2_ref, out_ref):
            pooled = jnp.sum(x_ref[...].astype(jnp.float32), axis=2) * inv_hw   # (N, C)
            z = jnp.maximum(
                jnp.dot(pooled, w1_ref[...], preferred_element_type=jnp.float32), 0.0)
            e = jnp.dot(z, w2_ref[...], preferred_element_type=jnp.float32)     # (N, C)
            g = 1.0 / (1.0 + jnp.exp(-e))
            x_val = x_ref[...]
            if mul_in_f32:
                x_val = x_val.astype(jnp.float32)
            else:
                g = g.astype(x_ref.dtype)
            out_ref[...] = (x_val * g[:, :, None]).astype(out_ref.dtype)

        out = pl.pallas_call(
            fused_kernel,
            out_shape=jax.ShapeDtypeStruct((N, C, HW), x.dtype),
            compiler_params=pltpu.CompilerParams(vmem_limit_bytes=vmem_limit),
        )(x, w1_t, w2_t)
        return out.reshape(N, C, H, W)

    # ---------------- streamed two-pass path ----------------
    auto_tn, auto_thw = _pick_tiles(N, C, HW, itemsize, pipe_budget)
    if tile_hw is None:
        tile_hw = auto_thw
    if tile_n is None:
        tile_n = auto_tn
    assert HW % tile_hw == 0, "tile_hw must divide H*W"
    assert N % tile_n == 0 and (tile_n == N or tile_n % 8 == 0)
    num_hw = HW // tile_hw
    num_n = N // tile_n

    # Lane-partial accumulator keeps the streaming loop on the VPU only; the single
    # cross-lane (XLU) reduce happens once in the finalize.
    lane_partial = (tile_hw % 128 == 0)
    acc_shape = (tile_n, C, 128) if lane_partial else (tile_n, C)

    # ---- kernel 1: streamed global-average-pool + tiny SE excitation ------------
    def pool_excite_kernel(x_ref, w1_ref, w2_ref, gates_ref, acc_ref):
        t = pl.program_id(1)                       # reduction (HW-tile) axis only

        @pl.when(t == 0)
        def _():
            acc_ref[...] = jnp.zeros_like(acc_ref)

        if lane_partial:
            acc = acc_ref[...]
            for s in range(tile_hw // 128):        # <= 4 lane-aligned VPU adds
                acc = acc + x_ref[:, :, s * 128:(s + 1) * 128].astype(jnp.float32)
            acc_ref[...] = acc
        else:
            acc_ref[...] += jnp.sum(x_ref[...].astype(jnp.float32), axis=2)

        @pl.when(t == pl.num_programs(1) - 1)
        def _():
            if lane_partial:
                pooled = jnp.sum(acc_ref[...], axis=2) * inv_hw     # (tile_n, C)
            else:
                pooled = acc_ref[...] * inv_hw
            z = jnp.maximum(
                jnp.dot(pooled, w1_ref[...], preferred_element_type=jnp.float32), 0.0)
            e = jnp.dot(z, w2_ref[...], preferred_element_type=jnp.float32)
            gates_ref[...] = (1.0 / (1.0 + jnp.exp(-e))).astype(gates_ref.dtype)

    # NOTE: if N == 1 the "parallel" axis is trivial; a further v7x refinement would
    # compute the excitation in plain JAX and parallelise the pooling over C blocks.
    gates = pl.pallas_call(
        pool_excite_kernel,
        out_shape=jax.ShapeDtypeStruct((N, C), jnp.float32),
        grid=(num_n, num_hw),
        in_specs=[
            pl.BlockSpec((tile_n, C, tile_hw), lambda n, t: (n, 0, t)),
            pl.BlockSpec((C, mid), lambda n, t: (0, 0)),
            pl.BlockSpec((mid, C), lambda n, t: (0, 0)),
        ],
        out_specs=pl.BlockSpec((tile_n, C), lambda n, t: (n, 0)),
        scratch_shapes=[pltpu.VMEM(acc_shape, jnp.float32)],
        compiler_params=pltpu.CompilerParams(
            dimension_semantics=("parallel", "arbitrary"),
            vmem_limit_bytes=vmem_limit),
    )(x, w1_t, w2_t)

    # Free layout change in XLA: gates carried with a trailing singleton lane axis so
    # kernel 2's broadcast is a lane splat (C already on sublanes inside the kernel).
    gates3 = gates.reshape(N, C, 1)

    # ---- kernel 2: streamed broadcast-multiply of x by the (N, C, 1) gates -------
    def scale_kernel(x_ref, gates_ref, out_ref):
        x_val = x_ref[...]                         # (tile_n, C, tile_hw)
        g = gates_ref[...]                         # (tile_n, C, 1)
        if mul_in_f32:
            x_val = x_val.astype(jnp.float32)
        else:
            g = g.astype(x_ref.dtype)
        out_ref[...] = (x_val * g).astype(out_ref.dtype)

    out = pl.pallas_call(
        scale_kernel,
        out_shape=jax.ShapeDtypeStruct((N, C, HW), x.dtype),
        grid=(num_n, num_hw),
        in_specs=[
            pl.BlockSpec((tile_n, C, tile_hw), lambda n, t: (n, 0, t)),
            pl.BlockSpec((tile_n, C, 1), lambda n, t: (n, 0, 0)),
        ],
        out_specs=pl.BlockSpec((tile_n, C, tile_hw), lambda n, t: (n, 0, t)),
        compiler_params=pltpu.CompilerParams(
            dimension_semantics=("parallel", "parallel"),
            vmem_limit_bytes=vmem_limit),
    )(x, gates3)

    return out.reshape(N, C, H, W)


def _se_reference(x: jax.Array, w1: jax.Array, w2: jax.Array) -> jax.Array:
    """Pure-JAX reference mirroring the PyTorch SEModule forward."""
    xf = x.astype(jnp.float32)
    s = jnp.mean(xf, axis=(2, 3))                          # avg_pool -> (N, C)
    z = jnp.maximum(s @ w1.astype(jnp.float32).T, 0.0)     # fc1 + ReLU
    e = jax.nn.sigmoid(z @ w2.astype(jnp.float32).T)       # fc2 + sigmoid
    return (xf * e[:, :, None, None]).astype(x.dtype)


if __name__ == "__main__":
    key = jax.random.PRNGKey(0)
    N, C, H, W = 2, 4, 16, 16
    reduction = 2
    mid = C // reduction

    k1, k2, k3 = jax.random.split(key, 3)
    x = jax.random.normal(k1, (N, C, H, W), dtype=jnp.float32)
    # 1x1-conv weights (bias=False), xavier-uniform-style init, squeezed to 2-D.
    w1 = jax.random.uniform(k2, (mid, C), jnp.float32, minval=-0.5, maxval=0.5)
    w2 = jax.random.uniform(k3, (C, mid), jnp.float32, minval=-0.5, maxval=0.5)

    ref = _se_reference(x, w1, w2)

    # Path 1: fused single-pass kernel (x easily fits VMEM at these shapes).
    out_fused = se_forward(x, w1, w2)
    jax.block_until_ready(out_fused)
    assert out_fused.shape == (N, C, H, W)
    assert jnp.allclose(out_fused, ref, atol=1e-4, rtol=1e-4), "fused path mismatch"

    # Path 2: streamed two-pass kernels; tile_hw=128 -> 2 HW tiles, exercising the
    # lane-partial accumulate + pl.when finalize + (N, C, 1) gate broadcast.
    out_stream = se_forward(x, w1, w2, force_streaming=True, tile_hw=128)
    jax.block_until_ready(out_stream)
    assert out_stream.shape == (N, C, H, W)
    assert jnp.allclose(out_stream, ref, atol=1e-4, rtol=1e-4), "streaming path mismatch"

    print("KERNEL_OK")
</pallas_src>

<mosaic_0001>
module attributes {stable_mosaic.version = 11 : i64} {
  func.func @fused_kernel(%arg0: memref<2x4x256xf32, #tpu.memory_space<vmem>>, %arg1: memref<4x2xf32, #tpu.memory_space<vmem>>, %arg2: memref<2x4xf32, #tpu.memory_space<vmem>>, %arg3: memref<2x4x256xf32, #tpu.memory_space<vmem>>) attributes {dimension_semantics = [], scalar_prefetch = 0 : i64, scratch_operands = 0 : i64, tpu.core_type = #tpu.core_type<tc>} {
    %c0 = arith.constant 0 : index
    %c0_0 = arith.constant 0 : index
    %c0_1 = arith.constant 0 : index
    %0 = vector.load %arg0[%c0, %c0_0, %c0_1] : memref<2x4x256xf32, #tpu.memory_space<vmem>>, vector<2x4x256xf32>
    %cst = arith.constant dense<0.000000e+00> : vector<2x4xf32>
    %1 = vector.multi_reduction <add>, %0, %cst [2] : vector<2x4x256xf32> to vector<2x4xf32>
    %cst_2 = arith.constant 3.906250e-03 : f32
    %2 = vector.broadcast %cst_2 : f32 to vector<2x4xf32>
    %3 = arith.mulf %1, %2 : vector<2x4xf32>
    %c0_3 = arith.constant 0 : index
    %c0_4 = arith.constant 0 : index
    %4 = vector.load %arg1[%c0_3, %c0_4] : memref<4x2xf32, #tpu.memory_space<vmem>>, vector<4x2xf32>
    %cst_5 = arith.constant dense<0.000000e+00> : vector<2x2xf32>
    %5 = tpu.matmul %3, %4, %cst_5 {dimension_numbers = #tpu.dot_dimension_numbers<[1], [0], [0], [1], [0, 0, 1, 1], [], []>} : vector<2x4xf32>, vector<4x2xf32>, vector<2x2xf32> -> vector<2x2xf32>
    %cst_6 = arith.constant 0.000000e+00 : f32
    %6 = vector.broadcast %cst_6 : f32 to vector<2x2xf32>
    %7 = arith.maximumf %5, %6 : vector<2x2xf32>
    %c0_7 = arith.constant 0 : index
    %c0_8 = arith.constant 0 : index
    %8 = vector.load %arg2[%c0_7, %c0_8] : memref<2x4xf32, #tpu.memory_space<vmem>>, vector<2x4xf32>
    %cst_9 = arith.constant dense<0.000000e+00> : vector<2x4xf32>
    %9 = tpu.matmul %7, %8, %cst_9 {dimension_numbers = #tpu.dot_dimension_numbers<[1], [0], [0], [1], [0, 0, 1, 1], [], []>} : vector<2x2xf32>, vector<2x4xf32>, vector<2x4xf32> -> vector<2x4xf32>
    %cst_10 = arith.constant 0.000000e+00 : f32
    %10 = vector.broadcast %cst_10 : f32 to vector<2x4xf32>
    %11 = arith.subf %10, %9 : vector<2x4xf32>
    %12 = math.exp %11 : vector<2x4xf32>
    %cst_11 = arith.constant 1.000000e+00 : f32
    %13 = vector.broadcast %cst_11 : f32 to vector<2x4xf32>
    %14 = arith.addf %13, %12 : vector<2x4xf32>
    %cst_12 = arith.constant 1.000000e+00 : f32
    %15 = vector.broadcast %cst_12 : f32 to vector<2x4xf32>
    %16 = arith.divf %15, %14 : vector<2x4xf32>
    %c0_13 = arith.constant 0 : index
    %c0_14 = arith.constant 0 : index
    %c0_15 = arith.constant 0 : index
    %17 = vector.load %arg0[%c0_13, %c0_14, %c0_15] : memref<2x4x256xf32, #tpu.memory_space<vmem>>, vector<2x4x256xf32>
    %18 = vector.shape_cast %16 : vector<2x4xf32> to vector<2x4x1xf32>
    %19 = vector.broadcast %18 : vector<2x4x1xf32> to vector<2x4x256xf32>
    %20 = arith.mulf %17, %19 : vector<2x4x256xf32>
    %c0_16 = arith.constant 0 : index
    %c0_17 = arith.constant 0 : index
    %c0_18 = arith.constant 0 : index
    %21 = vector.load %arg3[%c0_16, %c0_17, %c0_18] : memref<2x4x256xf32, #tpu.memory_space<vmem>>, vector<2x4x256xf32>
    tpu.vector_store %arg3[%c0_16, %c0_17, %c0_18], %20 {strides = array<i32>} : memref<2x4x256xf32, #tpu.memory_space<vmem>>, vector<2x4x256xf32>,
    return
  }
}

</mosaic_0001>

<bundles_post_ra>
// kernel: tpu_custom_call.1
= control target key start
LH: loop header
LB: loop body
LE: loop exit
PB: predicated region body
PF: predicated region fallthrough
CT: control target
= control target key end

     0   :  { %8 = vsyncpa [#allocation3], 0  ;;  %s439_s0 = inlined_call_operand.hbm [shape: f32[2,4,256], index: 0, kind: input, shape index: {}]   ;;  %s440_s1 = inlined_call_operand.vmem [shape: f32[4,2], index: 1, kind: input, shape index: {}]   ;;  %s441_s2 = inlined_call_operand.vmem [shape: f32[2,4], index: 2, kind: input, shape index: {}]   ;;  %s442_s3 = inlined_call_operand.hbm [shape: f32[2,4,256], index: 3, kind: output, shape index: {}]  }
   0x1   :  { %9 = vsyncpa [#allocation4], 0  ;;  %s359_s12 = smov [#allocation2]   ;;  %s311_s16 = scalar_lea.hbm %s439_s0, 256 }
   0x2   :  { %s15_s13 = sshll.u32 %s359_s12, 4  ;;  %p312_p0 = scmp.ne.s32.totalorder %s439_s0, %s311_s16  ;;  %s16_s13 = int_to_ptr.vmem [resolvable:$true] %s15_s13 }
   0x3   :  { %p315_p1 = scmp.lt.u32.totalorder %s311_s16, %s439_s0 }
   0x5   :  { %p317_p2 = pnand %p315_p1, %p312_p0 }
   0x7   :  { %320 = shalt.err (!%p317_p2)
}
   0x8   :  { %s321_s21 = scalar_lea.vmem %s16_s13, 256  ;;  %p326_p4 = scmp.lt.s32.totalorder %s16_s13, %s16_s13 }
   0x9   :  { %p322_p3 = scmp.ne.s32.totalorder %s16_s13, %s321_s21  ;;  %p327_p5 = scmp.lt.s32.totalorder %s321_s21, %s321_s21 }
   0xb   :  { %p328_p6 = por %p327_p5, %p326_p4 }
   0xd   :  { %p329_p7 = pnand %p328_p6, %p322_p3 }
   0xf   :  { %332 = shalt.err (!%p329_p7)
}
  0x10   :  { %s360_s22 = smov 128   ;;  %s361_s23 = smov 8  }
  0x11   :  { %21 = dma.hbm_to_vmem [thread:$0]  %s439_s0, 256, %s16_s13, [#allocation3], %s360_s22, %s360_s22, %s361_s23  }
  0x12   :  { %355 = dma.done.wait [#allocation3], 256  }
  0x13   :  { %356 = vsyncadd [#allocation3], 4294967040  ;;  %vm37_vm0 = vcmask 1043456   ;;  %v401_v0 = vld [vmem:[#allocation2] sm:$0xff]  ;;  %v403_v1 = vld [vmem:[#allocation2 + $0x8] sm:$0xff]  ;;  %v362_v11 = vmov 0.0   ;;  %v53_v12 = vlaneseq }
  0x14   :  { %v33_v2 = vcombine.high %v401_v0, %v401_v0  ;;  %v38_v3 = vsel %vm37_vm0, %v401_v0, 0.0  ;;  %v34_v4 = vcombine.high %v403_v1, %v403_v1  ;;  %v43_v6 = vsel %vm37_vm0, %v403_v1, 0.0  ;;  %v50_v10 = vld [vmem:[%s440_s1] sm:$0xf]  ;;  %288 = vmatprep.subr.mxu0 %v362_v11  ;;  %293 = vmatprep.subr.mxu1 %v362_v11 }
  0x15   :  { %vm363_vm1 = vmmov 0   ;;  %289 = vmatpush3.msk.msra.mxu0 %vm37_vm0, %v50_v10  ;;  %v54_v13 = vand.u32 127, %v53_v12  ;;  %v56_v14 = vshrl.u32 %v53_v12, 7  ;;  %vm63_vm2 = vcmask 1041409   ;;  %v142_v23 = vld [vmem:[%s441_s2] sm:$0x3] }
  0x16   :  { %v39_v5 = vsel %vm37_vm0, %v33_v2, 0.0  ;;  %v44_v7 = vsel %vm37_vm0, %v34_v4, 0.0  ;;  %290 = vmatprep.mubr.msk.f32.mxu0 %vm363_vm1, %v362_v11  ;;  %295 = vmatprep.mubr.msk.f32.mxu1 %vm363_vm1, %v362_v11  ;;  %vm65_vm3 = vcmask 31744   ;;  %vm147_vm4 = vcmask 1041408   ;;  %s365_s2 = smov [#allocation5]  }
  0x17   :  { %v40_v8 = vadd.f32 %v39_v5, %v38_v3  ;;  %v45_v9 = vadd.f32 %v44_v7, %v43_v6  ;;  %v57_v16 = vsub.s32 %v54_v13, %v56_v14  ;;  %294 = vmatpush3.msk.msra.mxu1 %vm147_vm4, %v142_v23  ;;  %vm143_vm5 = vcmask 15360   ;;  %s268_s28 = sshll.u32 %s365_s2, 4  ;;  %s269_s28 = int_to_ptr.vmem [resolvable:$true] %s268_s28 }
  0x18   :  { %v229_v33 = vsub.s32 0, %v56_v14  ;;  %v236_v36 = vsub.s32 1, %v56_v14  ;;  %v364_v38 = vmov 839922192   ;;  %s333_s29 = scalar_lea.vmem %s269_s28, 256  ;;  %p338_p9 = scmp.lt.s32.totalorder %s269_s28, %s269_s28 }
  0x19   :  { %41 = vadd.xlane.f32.xlu0 %v40_v8  ;;  %v244_v39 = vunpack.c.l.s4 %v364_v38  ;;  %p334_p8 = scmp.ne.s32.totalorder %s269_s28, %s333_s29  ;;  %p339_p10 = scmp.lt.s32.totalorder %s333_s29, %s333_s29 }
  0x1b   :  { %v245_v40 = vunpack.c.0.s8 %v244_v39  ;;  %p340_p11 = por %p339_p10, %p338_p9 }
  0x1d   :  { %46 = vadd.xlane.f32.xlu0 %v45_v9  ;;  %v248_v41 = vsub.s32 %v245_v40, %v56_v14  ;;  %p341_p12 = pnand %p340_p11, %p334_p8 }
  0xa6   :  { %v42_v15 = vpop.xlane.xlu0 %41 }
  0xa7   :  { %v48_v17 = vmul.f32 0.00390625, %v42_v15 }
  0xa9   :  { %v58_v20 = vrot.slane %v48_v17, %v57_v16 }
  0xaa   :  { %v47_v18 = vpop.xlane.xlu0 %46 }
  0xab   :  { %v49_v19 = vmul.f32 0.00390625, %v47_v18 }
  0xad   :  { %v62_v21 = vrot.slane %v49_v19, %v57_v16 }
  0xaf   :  { %v64_v22 = vsel %vm63_vm2, %v62_v21, %v58_v20 }
  0xb0   :  { %291 = vmatmul.mubr.msk.f32.vlgmr.msra.gmra.mrb[0].mxu0 %vm65_vm3, %v64_v22 }
 0x183   :  { %v137_v24 = vpop.f32.mrb[0].mxu0 }
 0x184   :  { %v141_v25 = vmax.f32 %v137_v24, 0.0  ;;  %v292_v26 = vpop.f32.mrb[1].mxu0 }
 0x186   :  { %296 = vmatmul.mubr.msk.f32.vlgmr.msra.gmra.mrb[0].mxu1 %vm143_vm5, %v141_v25 }
 0x259   :  { %v217_v27 = vpop.f32.mrb[0].mxu1 }
 0x25a   :  { %v221_v28 = vsub.f32 0.0, %v217_v27  ;;  %v297_v29 = vpop.f32.mrb[1].mxu1 }
 0x25c   :  { %v222_v30 = vmul.f32 1.442695, %v221_v28 }
 0x25e   :  { %307 = vpow2.f32 %v222_v30 }
 0x268   :  { %v308_v31 = vpop.eup %307 }
 0x269   :  { %v224_v32 = vadd.f32 1.0, %v308_v31 }
 0x26b   :  { %309 = vrcp.f32 %v224_v32 }
 0x275   :  { %v310_v34 = vpop.eup %309 }
 0x276   :  { %v230_v35 = vrot.slane %v310_v34, %v229_v33  ;;  %v237_v37 = vrot.slane %v310_v34, %v236_v36 }
 0x278   :  { %232 = vbcast.lane.b32.xlu1 %v230_v35, 256 }
 0x27c   :  { %239 = vbcast.lane.b32.xlu1 %v237_v37, 256 }
 0x2ea   :  { %v233_v42 = vpop.permute.xlu1 %232 }
 0x2eb   :  { %v249_v43 = vrot.slane %v233_v42, %v248_v41 }
 0x2ed   :  { %v259_v44 = vmul.f32 %v249_v43, %v401_v0 }
 0x2ee   :  { %v240_v45 = vpop.permute.xlu1 %239 }
 0x2ef   :  { %261 = vst [vmem:[#allocation5] sm:$0xff] %v259_v44  ;;  %v256_v46 = vrot.slane %v240_v45, %v248_v41 }
 0x2f1   :  { %v260_v47 = vmul.f32 %v256_v46, %v403_v1 }
 0x2f3   :  { %262 = vst [vmem:[#allocation5 + $0x8] sm:$0xff] %v260_v47 }
 0x2f4   :  { %344 = shalt.err (!%p341_p12)
}
 0x2f5   :  { %s345_s5 = scalar_lea.hbm %s442_s3, 256 }
 0x2f6   :  { %p346_p13 = scmp.ne.s32.totalorder %s442_s3, %s345_s5  ;;  %p349_p0 = scmp.lt.u32.totalorder %s345_s5, %s442_s3 }
 0x2f8   :  { %p351_p1 = pnand %p349_p0, %p346_p13 }
 0x2fa   :  { %354 = shalt.err (!%p351_p1)
}
 0x2fb   :  { %274 = dma.vmem_to_hbm [thread:$0]  %s269_s28, 256, %s442_s3, [#allocation4], %s360_s22, %s360_s22, %s361_s23  }
 0x2fc   :  { %357 = dma.done.wait [#allocation4], 256  }
 0x2fd   :  { %358 = vsyncadd [#allocation4], 4294967040 }
 0x2fe   :  { %278 = vsyncpa [#allocation3], 1 }
 0x2ff   :  { %279 = vsyncpa [#allocation4], 1 }

</bundles_post_ra>
